<compile_context>
chip_gen: v5e
topology: v5e:2x2
jax: 0.10.0
libtpu: 0.0.40
codegen_flags: <defaults>
</compile_context>

<pallas_src>
import functools

import jax
import jax.numpy as jnp
from jax.experimental import pallas as pl
from jax.experimental.pallas import tpu as pltpu


# Per-batch (C, H*W) slab size above which the single-pass resident kernel is
# not attempted (4x double-buffered slabs must fit scoped VMEM on all chips).
_RESIDENT_SLAB_LIMIT = 6 << 20


# ----------------------------- kernels --------------------------------------


def _resident_kernel(x_ref, w1t_ref, b1_ref, w2_ref, b2_ref, o_ref):
    # x_ref/o_ref: (BT, C, HW)   w1t: (C, mid)  b1: (1, mid)  w2: (C, mid)  b2: (1, C)
    hw = x_ref.shape[-1]
    # Global average pool: lane-axis reduce with an explicit f32 accumulator.
    pooled = jnp.sum(x_ref[...], axis=-1, dtype=jnp.float32) * (1.0 / hw)      # (BT, C)
    # 1x1 conv C -> mid, ReLU (broadcast-mul + sublane reduce; stays off MXU).
    h = jnp.sum(pooled[:, :, None] * w1t_ref[...][None, :, :], axis=1)         # (BT, mid)
    h = jnp.maximum(h + b1_ref[...], 0.0)
    # 1x1 conv mid -> C, sigmoid (lane reduce + EUP).
    logits = jnp.sum(h[:, None, :] * w2_ref[...][None, :, :], axis=-1) + b2_ref[...]  # (BT, C)
    attn = jax.nn.sigmoid(logits).astype(o_ref.dtype)                          # (BT, C)
    # Gate in native dtype: second read of the already-resident VMEM block,
    # no extra full-slab f32 temporary.
    o_ref[...] = x_ref[...] * attn[:, :, None]


def _pool_kernel(x_ref, sum_ref):
    # Fallback phase 1: accumulate spatial sums over HW tiles.
    # x_ref: (1, C, THW)   sum_ref: (1, 1, C) f32, resident across the t axis.
    @pl.when(pl.program_id(1) == 0)
    def _():
        sum_ref[...] = jnp.zeros_like(sum_ref)

    part = jnp.sum(x_ref[...], axis=-1, dtype=jnp.float32)                     # (1, C)
    sum_ref[...] += part[:, None, :]


def _gate_kernel(sum_ref, w1t_ref, b1_ref, w2_ref, b2_ref, x_ref, o_ref, *, inv_hw):
    # Fallback phase 2: recompute the (tiny) excite MLP and gate one HW tile.
    pooled = sum_ref[0] * inv_hw                                               # (1, C)
    h = jnp.sum(pooled[:, :, None] * w1t_ref[...][None, :, :], axis=1)         # (1, mid)
    h = jnp.maximum(h + b1_ref[...], 0.0)
    logits = jnp.sum(h[:, None, :] * w2_ref[...][None, :, :], axis=-1) + b2_ref[...]  # (1, C)
    attn = jax.nn.sigmoid(logits).astype(o_ref.dtype)                          # (1, C)
    o_ref[...] = x_ref[...] * attn[:, :, None]


# --------------------------- tiling helpers ----------------------------------


def _pick_batch_tile(B, bytes_per_batch, target_bytes):
    """Largest divisor of B with block <= target and (if B>=2) >= 2 grid steps."""
    best = 1
    for cand in range(1, B + 1):
        if B % cand != 0:
            continue
        if cand * bytes_per_batch > target_bytes:
            continue
        if B >= 2 and B // cand < 2:
            continue  # keep >= 2 grid steps so v7x megacore can split the batch
        best = cand
    return best


def _pick_hw_tile(HW, C, itemsize, target_bytes):
    """Largest multiple-of-128 divisor of HW whose (C, t) tile fits the budget."""
    best = None
    t = 128
    while t <= HW:
        if HW % t == 0 and C * t * itemsize <= target_bytes:
            best = t
        t += 128
    if best is None:
        # TODO(synk): no lane-aligned divisor of H*W fits the tile budget; fall
        # back to the full spatial extent (legal block, may exceed the budget).
        best = HW
    return best


def _vmem_limit(in_block_bytes, out_block_bytes, weight_bytes):
    need = 2 * in_block_bytes + 2 * out_block_bytes + weight_bytes
    return int(min(max(2 * need + (4 << 20), 16 << 20), 48 << 20))


# ------------------------------ wrapper --------------------------------------


def channel_attention_forward(x, w1, b1, w2, b2, *,
                              block_target_bytes=1 << 20,
                              hw_tile_bytes=1 << 20,
                              force_two_pass=False):
    """x: (B,C,H,W); w1: (mid,C,1,1); b1: (mid,); w2: (C,mid,1,1); b2: (C,)."""
    B, C, H, W = x.shape
    mid = w1.shape[0]
    HW = H * W
    itemsize = x.dtype.itemsize

    # Lane-dense view: spatial axis last (multiple of 128 for typical sizes).
    x_flat = x.reshape(B, C, HW)
    w1t = jnp.transpose(w1.reshape(mid, C)).astype(jnp.float32)   # (C, mid)
    b1r = b1.reshape(1, mid).astype(jnp.float32)
    w2r = w2.reshape(C, mid).astype(jnp.float32)                  # (C, mid)
    b2r = b2.reshape(1, C).astype(jnp.float32)
    weight_bytes = (w1t.size + b1r.size + w2r.size + b2r.size) * 4

    bytes_per_batch = C * HW * itemsize

    if (not force_two_pass) and bytes_per_batch <= _RESIDENT_SLAB_LIMIT:
        # ---- single fused pass: x streamed from HBM exactly once ----
        bt = _pick_batch_tile(B, bytes_per_batch, block_target_bytes)
        block_bytes = bt * bytes_per_batch
        out = pl.pallas_call(
            _resident_kernel,
            out_shape=jax.ShapeDtypeStruct((B, C, HW), x.dtype),
            grid=(B // bt,),
            in_specs=[
                pl.BlockSpec((bt, C, HW), lambda b: (b, 0, 0)),   # activations
                pl.BlockSpec((C, mid), lambda b: (0, 0)),         # W1^T
                pl.BlockSpec((1, mid), lambda b: (0, 0)),         # b1
                pl.BlockSpec((C, mid), lambda b: (0, 0)),         # W2
                pl.BlockSpec((1, C), lambda b: (0, 0)),           # b2
            ],
            out_specs=pl.BlockSpec((bt, C, HW), lambda b: (b, 0, 0)),
            compiler_params=pltpu.CompilerParams(
                dimension_semantics=("parallel",),
                vmem_limit_bytes=_vmem_limit(block_bytes, block_bytes,
                                             weight_bytes)),
        )(x_flat, w1t, b1r, w2r, b2r)
        return out.reshape(B, C, H, W)

    # ---- two-pass fallback for very large feature maps (extra HBM read of x) ----
    thw = _pick_hw_tile(HW, C, itemsize, hw_tile_bytes)
    n_t = HW // thw
    tile_bytes = C * thw * itemsize

    sums = pl.pallas_call(
        _pool_kernel,
        out_shape=jax.ShapeDtypeStruct((B, 1, C), jnp.float32),
        grid=(B, n_t),
        in_specs=[pl.BlockSpec((1, C, thw), lambda b, t: (b, 0, t))],
        out_specs=pl.BlockSpec((1, 1, C), lambda b, t: (b, 0, 0)),
        compiler_params=pltpu.CompilerParams(
            dimension_semantics=("parallel", "arbitrary"),
            vmem_limit_bytes=_vmem_limit(tile_bytes, 4 * C, weight_bytes)),
    )(x_flat)

    out = pl.pallas_call(
        functools.partial(_gate_kernel, inv_hw=1.0 / HW),
        out_shape=jax.ShapeDtypeStruct((B, C, HW), x.dtype),
        grid=(B, n_t),
        in_specs=[
            pl.BlockSpec((1, 1, C), lambda b, t: (b, 0, 0)),      # spatial sums
            pl.BlockSpec((C, mid), lambda b, t: (0, 0)),          # W1^T
            pl.BlockSpec((1, mid), lambda b, t: (0, 0)),          # b1
            pl.BlockSpec((C, mid), lambda b, t: (0, 0)),          # W2
            pl.BlockSpec((1, C), lambda b, t: (0, 0)),            # b2
            pl.BlockSpec((1, C, thw), lambda b, t: (b, 0, t)),    # activations
        ],
        out_specs=pl.BlockSpec((1, C, thw), lambda b, t: (b, 0, t)),
        compiler_params=pltpu.CompilerParams(
            dimension_semantics=("parallel", "parallel"),
            vmem_limit_bytes=_vmem_limit(tile_bytes, tile_bytes, weight_bytes)),
    )(sums, w1t, b1r, w2r, b2r, x_flat)
    return out.reshape(B, C, H, W)


# ----------------------------- reference -------------------------------------


def channel_attention_reference(x, w1, b1, w2, b2):
    """Pure-JAX reference mirroring the PyTorch forward."""
    B, C, H, W = x.shape
    mid = w1.shape[0]
    pooled = jnp.mean(x, axis=(2, 3))                         # (B, C)
    h = pooled @ w1.reshape(mid, C).T + b1[None, :]           # (B, mid)
    h = jnp.maximum(h, 0.0)
    a = h @ w2.reshape(C, mid).T + b2[None, :]                # (B, C)
    a = jax.nn.sigmoid(a)
    return x * a[:, :, None, None]


if __name__ == "__main__":
    key = jax.random.PRNGKey(0)
    kx, kw1, kb1, kw2, kb2 = jax.random.split(key, 5)

    B, C, H, W = 2, 32, 16, 16
    reduction = 16
    mid = C // reduction

    x = jax.random.normal(kx, (B, C, H, W), dtype=jnp.float32)

    # Conv2d(C, mid, 1) and Conv2d(mid, C, 1) parameters (PyTorch-style init).
    bound1 = (1.0 / C) ** 0.5
    w1 = jax.random.uniform(kw1, (mid, C, 1, 1), jnp.float32, -bound1, bound1)
    b1 = jax.random.uniform(kb1, (mid,), jnp.float32, -bound1, bound1)
    bound2 = (1.0 / mid) ** 0.5
    w2 = jax.random.uniform(kw2, (C, mid, 1, 1), jnp.float32, -bound2, bound2)
    b2 = jax.random.uniform(kb2, (C,), jnp.float32, -bound2, bound2)

    y_ref = channel_attention_reference(x, w1, b1, w2, b2)

    # Main (resident, batch-blocked) path.
    y = jax.block_until_ready(channel_attention_forward(x, w1, b1, w2, b2))
    assert y.shape == (B, C, H, W)
    assert jnp.allclose(y, y_ref, atol=1e-5, rtol=1e-5), \
        f"resident path max err {jnp.max(jnp.abs(y - y_ref))}"

    # Also exercise the two-pass large-feature-map fallback (forced, small tiles).
    y2 = jax.block_until_ready(
        channel_attention_forward(x, w1, b1, w2, b2,
                                  force_two_pass=True, hw_tile_bytes=16 * 1024))
    assert jnp.allclose(y2, y_ref, atol=1e-5, rtol=1e-5), \
        f"two-pass path max err {jnp.max(jnp.abs(y2 - y_ref))}"

    print("KERNEL_OK")
</pallas_src>

<mosaic_0001>
module attributes {stable_mosaic.version = 11 : i64} {
  func.func @_resident_kernel(%arg0: i32, %arg1: memref<1x32x256xf32, #tpu.memory_space<vmem>>, %arg2: memref<32x2xf32, #tpu.memory_space<vmem>>, %arg3: memref<1x2xf32, #tpu.memory_space<vmem>>, %arg4: memref<32x2xf32, #tpu.memory_space<vmem>>, %arg5: memref<1x32xf32, #tpu.memory_space<vmem>>, %arg6: memref<1x32x256xf32, #tpu.memory_space<vmem>>) attributes {dimension_semantics = [#tpu.dimension_semantics<parallel>], iteration_bounds = array<i64: 2>, scalar_prefetch = 0 : i64, scratch_operands = 0 : i64, tpu.core_type = #tpu.core_type<tc>, window_params = [{transform_indices = @transform_0, window_bounds = array<i64: 1, 32, 256>}, {pipeline_mode = #tpu.pipeline_mode<synchronous>, transform_indices = @transform_1, window_bounds = array<i64: 32, 2>}, {pipeline_mode = #tpu.pipeline_mode<synchronous>, transform_indices = @transform_2, window_bounds = array<i64: 1, 2>}, {pipeline_mode = #tpu.pipeline_mode<synchronous>, transform_indices = @transform_3, window_bounds = array<i64: 32, 2>}, {pipeline_mode = #tpu.pipeline_mode<synchronous>, transform_indices = @transform_4, window_bounds = array<i64: 1, 32>}, {transform_indices = @transform_5, window_bounds = array<i64: 1, 32, 256>}]} {
    %c0 = arith.constant 0 : index
    %c0_0 = arith.constant 0 : index
    %c0_1 = arith.constant 0 : index
    %0 = vector.load %arg1[%c0, %c0_0, %c0_1] : memref<1x32x256xf32, #tpu.memory_space<vmem>>, vector<1x32x256xf32>
    %cst = arith.constant dense<0.000000e+00> : vector<1x32xf32>
    %1 = vector.multi_reduction <add>, %0, %cst [2] : vector<1x32x256xf32> to vector<1x32xf32>
    %cst_2 = arith.constant 3.906250e-03 : f32
    %2 = vector.broadcast %cst_2 : f32 to vector<1x32xf32>
    %3 = arith.mulf %1, %2 : vector<1x32xf32>
    %4 = vector.shape_cast %3 : vector<1x32xf32> to vector<1x32x1xf32>
    %c0_3 = arith.constant 0 : index
    %c0_4 = arith.constant 0 : index
    %5 = vector.load %arg2[%c0_3, %c0_4] : memref<32x2xf32, #tpu.memory_space<vmem>>, vector<32x2xf32>
    %6 = vector.shape_cast %5 : vector<32x2xf32> to vector<1x32x2xf32>
    %7 = vector.broadcast %4 : vector<1x32x1xf32> to vector<1x32x2xf32>
    %8 = arith.mulf %7, %6 : vector<1x32x2xf32>
    %cst_5 = arith.constant dense<0.000000e+00> : vector<1x2xf32>
    %9 = vector.multi_reduction <add>, %8, %cst_5 [1] : vector<1x32x2xf32> to vector<1x2xf32>
    %c0_6 = arith.constant 0 : index
    %c0_7 = arith.constant 0 : index
    %10 = vector.load %arg3[%c0_6, %c0_7] : memref<1x2xf32, #tpu.memory_space<vmem>>, vector<1x2xf32>
    %11 = arith.addf %9, %10 : vector<1x2xf32>
    %cst_8 = arith.constant 0.000000e+00 : f32
    %12 = vector.broadcast %cst_8 : f32 to vector<1x2xf32>
    %13 = arith.maximumf %11, %12 : vector<1x2xf32>
    %14 = vector.shape_cast %13 : vector<1x2xf32> to vector<1x1x2xf32>
    %c0_9 = arith.constant 0 : index
    %c0_10 = arith.constant 0 : index
    %15 = vector.load %arg4[%c0_9, %c0_10] : memref<32x2xf32, #tpu.memory_space<vmem>>, vector<32x2xf32>
    %16 = vector.shape_cast %15 : vector<32x2xf32> to vector<1x32x2xf32>
    %17 = vector.broadcast %14 : vector<1x1x2xf32> to vector<1x32x2xf32>
    %18 = arith.mulf %17, %16 : vector<1x32x2xf32>
    %cst_11 = arith.constant dense<0.000000e+00> : vector<1x32xf32>
    %19 = vector.multi_reduction <add>, %18, %cst_11 [2] : vector<1x32x2xf32> to vector<1x32xf32>
    %c0_12 = arith.constant 0 : index
    %c0_13 = arith.constant 0 : index
    %20 = vector.load %arg5[%c0_12, %c0_13] : memref<1x32xf32, #tpu.memory_space<vmem>>, vector<1x32xf32>
    %21 = arith.addf %19, %20 : vector<1x32xf32>
    %22 = arith.negf %21 : vector<1x32xf32>
    %23 = math.exp %22 : vector<1x32xf32>
    %cst_14 = arith.constant 1.000000e+00 : f32
    %24 = vector.broadcast %cst_14 : f32 to vector<1x32xf32>
    %25 = arith.addf %24, %23 : vector<1x32xf32>
    %26 = arith.divf %24, %25 : vector<1x32xf32>
    %c0_15 = arith.constant 0 : index
    %c0_16 = arith.constant 0 : index
    %c0_17 = arith.constant 0 : index
    %27 = vector.load %arg1[%c0_15, %c0_16, %c0_17] : memref<1x32x256xf32, #tpu.memory_space<vmem>>, vector<1x32x256xf32>
    %28 = vector.shape_cast %26 : vector<1x32xf32> to vector<1x32x1xf32>
    %29 = vector.broadcast %28 : vector<1x32x1xf32> to vector<1x32x256xf32>
    %30 = arith.mulf %27, %29 : vector<1x32x256xf32>
    %c0_18 = arith.constant 0 : index
    %c0_19 = arith.constant 0 : index
    %c0_20 = arith.constant 0 : index
    %31 = vector.load %arg6[%c0_18, %c0_19, %c0_20] : memref<1x32x256xf32, #tpu.memory_space<vmem>>, vector<1x32x256xf32>
    tpu.vector_store %arg6[%c0_18, %c0_19, %c0_20], %30 {strides = array<i32>} : memref<1x32x256xf32, #tpu.memory_space<vmem>>, vector<1x32x256xf32>,
    return
  }
  func.func @transform_0(%arg0: i32) -> (i32, i32, i32) {
    %c0_i32 = arith.constant 0 : i32
    %c0_i32_0 = arith.constant 0 : i32
    %c0_i32_1 = arith.constant 0 : i32
    return %arg0, %c0_i32, %c0_i32_0 : i32, i32, i32
  }
  func.func @transform_1(%arg0: i32) -> (i32, i32) {
    %c0_i32 = arith.constant 0 : i32
    %c0_i32_0 = arith.constant 0 : i32
    %c0_i32_1 = arith.constant 0 : i32
    return %c0_i32, %c0_i32_0 : i32, i32
  }
  func.func @transform_2(%arg0: i32) -> (i32, i32) {
    %c0_i32 = arith.constant 0 : i32
    %c0_i32_0 = arith.constant 0 : i32
    %c0_i32_1 = arith.constant 0 : i32
    return %c0_i32, %c0_i32_0 : i32, i32
  }
  func.func @transform_3(%arg0: i32) -> (i32, i32) {
    %c0_i32 = arith.constant 0 : i32
    %c0_i32_0 = arith.constant 0 : i32
    %c0_i32_1 = arith.constant 0 : i32
    return %c0_i32, %c0_i32_0 : i32, i32
  }
  func.func @transform_4(%arg0: i32) -> (i32, i32) {
    %c0_i32 = arith.constant 0 : i32
    %c0_i32_0 = arith.constant 0 : i32
    %c0_i32_1 = arith.constant 0 : i32
    return %c0_i32, %c0_i32_0 : i32, i32
  }
  func.func @transform_5(%arg0: i32) -> (i32, i32, i32) {
    %c0_i32 = arith.constant 0 : i32
    %c0_i32_0 = arith.constant 0 : i32
    %c0_i32_1 = arith.constant 0 : i32
    return %arg0, %c0_i32, %c0_i32_0 : i32, i32, i32
  }
}

</mosaic_0001>

<bundles_post_ra>
// kernel: tpu_custom_call.1
= control target key start
LH: loop header
LB: loop body
LE: loop exit
PB: predicated region body
PF: predicated region fallthrough
CT: control target
= control target key end

     0   :  { %10 = vsyncpa [#allocation3], 0  ;;  %s986_s0 = inlined_call_operand.hbm [shape: f32[2,32,256], index: 0, kind: input, shape index: {}]   ;;  %s987_s1 = inlined_call_operand.vmem [shape: f32[32,2], index: 1, kind: input, shape index: {}]   ;;  %s988_s2 = inlined_call_operand.vmem [shape: f32[1,2], index: 2, kind: input, shape index: {}]   ;;  %s989_s3 = inlined_call_operand.vmem [shape: f32[32,2], index: 3, kind: input, shape index: {}]   ;;  %s990_s4 = inlined_call_operand.vmem [shape: f32[1,32], index: 4, kind: input, shape index: {}]   ;;  %s991_s5 = inlined_call_operand.hbm [shape: f32[2,32,256], index: 5, kind: output, shape index: {}]  }
   0x1   :  { %12 = vsyncpa [#allocation3 + $0x1], 0 }
   0x2   :  { %13 = vsyncpa [#allocation4], 0 }
   0x3   :  { %15 = vsyncpa [#allocation4 + $0x1], 0  ;;  %s779_s18 = smov 0   ;;  %s781_s19 = smov 0  }
   0x4   :  { %s783_s20 = smov 0   ;;  %s785_s21 = smov 0  }
   0x5 LB: > { %s800_s22 = sadd.s32 4294967295, %s742_s21   ;;  %s551_s23 = sadd.s32 4294967294, %s742_s21   ;;  %s742_s21 = sphi %s785_s21, %s1001_s21   ;;  %s738_s20 = sphi %s783_s20, %s1000_s20   ;;  %s734_s19 = sphi %s781_s19, %s999_s19   ;;  %s730_s18 = sphi %s779_s18, %s998_s18  }
   0x6   : > { %s804_s24 = sadd.s32 1, %s742_s21   ;;  %s28_s25 = sadd.s32 1, %s738_s20 }
   0x7   : > { %s25_s26 = ssub.s32 %s742_s21, %s804_s24  ;;  %p35_p0 = scmp.ne.s32.totalorder %s738_s20, %s734_s19 }
   0x8   : > { %p26_p1 = scmp.eq.s32.totalorder %s25_s26, 0  ;;  %p36_p2 = scmp.eq.s32.totalorder %s742_s21, 0 }
   0x9   : > { %p41_p3 = scmp.ne.s32.totalorder %s734_s19, %s730_s18  ;;  %p42_p4 = scmp.eq.s32.totalorder %s800_s22, 0 }
   0xa   : > { %s816_s27 = scalar_select %p26_p1, %s738_s20, %s28_s25  }
   0xb   : > { %p818_p5 = por %p36_p2, %p35_p0  ;;  %p822_p6 = por %p42_p4, %p41_p3 }
   0xc   : > { %p149_p7 = scmp.eq.s32.totalorder %s800_s22, 1  ;;  %p155_p8 = scmp.eq.s32.totalorder %s551_s23, 1 }
   0xd   : > { %p583_p10 = scmp.lt.s32.totalorder %s742_s21, 2  ;;  %s187_s7 = sand.u32 1, %s738_s20  }
   0xe   : > { %p829_p11 = por %p149_p7, %p35_p0  ;;  %p833_p12 = por %p155_p8, %p41_p3 }
   0xf   : > { %s569_s8 = sshll.u32 %s742_s21, 6  ;;  %s554_s9 = sshll.u32 %s187_s7, 6 }
  0x10   : > { %s196_s12 = scalar_lea.hbm %s986_s0, %s569_s8  ;;  %s191_s14 = scalar_lea.vmem [#allocation2], %s554_s9 }
  0x11   : > { %s197_s13 = sshll.u32 %s196_s12, 4  ;;  %s199_s15 = sshll.u32 %s191_s14, 4  ;;  %s198_s13 = int_to_ptr.hbm [resolvable:$true] %s197_s13  ;;  %s200_s15 = int_to_ptr.vmem [resolvable:$true] %s199_s15 }
  0x12   : > { %p844_p13 = pnand %p583_p10, %p818_p5  ;;  %p557_p0 = scmp.ge.s32.totalorder %s742_s21, 1 }
  0x13   : > { %p207_p1 = scmp.lt.s32.totalorder %s742_s21, 3  ;;  %s188_s17 = scalar_lea.sflag [#allocation3], %s187_s7 }
  0x14   : > { %s646_s23 = sshra.s32 %s198_s13, 4  ;;  %p650_p3 = pneg %p844_p13  ;;  %s647_s23 = int_to_ptr.hbm [resolvable:$true] %s646_s23 }
  0x15   : > { %s648_s25 = scalar_lea.hbm %s647_s23, 64  ;;  %s653_s28 = scalar_lea.hbm %s986_s0, 128 }
  0x16   : > { %p649_p2 = scmp.ne.s32.totalorder %s647_s23, %s648_s25  ;;  %p654_p5 = scmp.lt.s32.totalorder %s647_s23, %s986_s0 }
  0x17   : > { %p655_p8 = scmp.lt.s32.totalorder %s653_s28, %s648_s25 }
  0x18   : > { %p651_p4 = pnand %p650_p3, %p649_p2 }
  0x19   : > { %p656_p10 = por %p655_p8, %p654_p5 }
  0x1a   : > { %p652_p7 = pneg %p651_p4 }
  0x1c   : > { %p657_p9 = pnand %p656_p10, %p652_p7 }
  0x1e   : > { %660 = shalt.err (!%p657_p9)
}
  0x1f   : > { %s744_s7 = smov 256   ;;  %s745_s11 = smov 16  }
  0x20   : > { %578 = dma.hbm_to_vmem [thread:$0]  (!%p844_p13), %s198_s13, 1024, %s200_s15, %s188_s17, %s744_s7, %s744_s7, %s745_s11  }
  0x21   : > { %p208_p2 = pnand %p557_p0, %p207_p1 }
  0x22   : > { %s865_s12 = sand.u32 (!%p208_p2), 1, %s734_s19  }
  0x23   : > { %211 = sbr.rel (%p208_p2) target bundleno = 495 (0x1ef), region = 40  ;;  %s558_s14 = sshll.u32 (!%p208_p2), %s865_s12, 6 }
  0x24   : > { %s214_s23 = scalar_lea.sflag (!%p208_p2), [#allocation3], %s865_s12  ;;  %s217_s25 = scalar_lea.vmem (!%p208_p2), [#allocation2], %s558_s14 }
  0x28   : > { %721 = dma.done.wait (%p822_p6), %s214_s23, 1024  }
  0x29   : > { %723 = vsyncadd (%p822_p6), %s214_s23, 4294966272  ;;  %v318_v0 = vlaneseq  ;;  %v875_v2 = vld [vmem:[%s217_s25] sm:$0xff]  ;;  %v877_v3 = vld [vmem:[%s217_s25 + $0x8] sm:$0xff]  ;;  %vm277_vm0 = vcmask 15360   ;;  %s244_s8 = scalar_lea.vmem [#allocation5], %s558_s14  ;;  %s570_s28 = sshll.u32 %s800_s22, 6 }
  0x2a   : > { %v879_v4 = vld [vmem:[%s217_s25 + $0x20] sm:$0xff]  ;;  %v253_v5 = vadd.f32 %v877_v3, %v875_v2  ;;  %v883_v6 = vld [vmem:[%s217_s25 + $0x28] sm:$0xff]  ;;  %v892_v9 = vld [vmem:[%s217_s25 + $0x10] sm:$0xff]  ;;  %s474_s14 = scalar_lea.hbm %s991_s5, %s570_s28  ;;  %s475_s7 = sshll.u32 %s244_s8, 4  ;;  %s476_s7 = int_to_ptr.vmem [resolvable:$true] %s475_s7 }
  0x2b   : > { %v319_v1 = vshrl.u32 %v318_v0, 7  ;;  %v259_v7 = vadd.f32 %v883_v6, %v879_v4  ;;  %v890_v8 = vld [vmem:[%s990_s4] ss:$0 sm:$0xff]  ;;  %v894_v10 = vld [vmem:[%s217_s25 + $0x18] sm:$0xff]  ;;  %v896_v11 = vld [vmem:[%s217_s25 + $0x30] sm:$0xff]  ;;  %v746_v0 = vmov 0  }
  0x2c   : > { %254 = vadd.xlane.f32.xlu0 %v253_v5  ;;  %v898_v12 = vld [vmem:[%s217_s25 + $0x38] sm:$0xff]  ;;  %v256_v13 = vadd.f32 %v894_v10, %v892_v9  ;;  %v269_v18 = vld [vmem:[%s987_s1] sm:$0xff]  ;;  %v271_v20 = vld [vmem:[%s987_s1 + $0x10] sm:$0xff]  ;;  %s477_s11 = sshll.u32 %s474_s14, 4  ;;  %s463_s22 = scalar_lea.sflag [#allocation4], %s865_s12  ;;  %s478_s11 = int_to_ptr.hbm [resolvable:$true] %s477_s11 }
  0x2d   : > { %622 = vset.pattern.permute.xlu2 %v319_v1  ;;  %260 = vadd.xlane.f32.xlu1 %v259_v7  ;;  %v262_v14 = vadd.f32 %v898_v12, %v896_v11  ;;  %v270_v21 = vld [vmem:[%s987_s1 + $0x8] sm:$0xff]  ;;  %v272_v25 = vld [vmem:[%s987_s1 + $0x18] sm:$0xff]  ;;  %v326_v38 = vadd.s32 8, %v319_v1  ;;  %v332_v39 = vadd.s32 16, %v319_v1  ;;  %v291_v45 = vld [vmem:[%s988_s2] sm:$0x1] }
  0x2e   : > { %v338_v49 = vadd.s32 24, %v319_v1  ;;  %v297_v50 = vld [vmem:[%s989_s3 + $0x18] sm:$0xff]  ;;  %v296_v51 = vld [vmem:[%s989_s3 + $0x10] sm:$0xff]  ;;  %v294_v52 = vld [vmem:[%s989_s3] sm:$0xff]  ;;  %s690_s23 = sshra.s32 %s478_s11, 4  ;;  %s696_s15 = scalar_lea.hbm %s991_s5, 128  ;;  %s691_s23 = int_to_ptr.hbm [resolvable:$true] %s690_s23 }
  0x2f   : > { %623 = vset.pattern.permute.xlu0 %v326_v38  ;;  %624 = vset.pattern.permute.xlu1 %v332_v39  ;;  %v295_v60 = vld [vmem:[%s989_s3 + $0x8] sm:$0xff]  ;;  %s692_s25 = scalar_lea.hbm %s691_s23, 64  ;;  %p697_p0 = scmp.lt.s32.totalorder %s691_s23, %s991_s5 }
  0x30   : > { %p693_p6 = scmp.ne.s32.totalorder %s691_s23, %s692_s25  ;;  %p698_p1 = scmp.lt.s32.totalorder %s696_s15, %s692_s25 }
  0x32   : > { %p694_p9 = pnand %p693_p6, %p829_p11  ;;  %p699_p3 = por %p698_p1, %p697_p0 }
  0x34   : > { %257 = vadd.xlane.f32.xlu0 %v256_v13  ;;  %p695_p13 = pneg %p694_p9 }
  0x35   : > { %322 = vperm.xlu2 %622, %v890_v8   ;;  %263 = vadd.xlane.f32.xlu1 %v262_v14 }
  0x36   : > { %p700_p4 = pnand %p699_p3, %p695_p13 }
  0x3d   : > { %625 = vset.pattern.permute.xlu2 %v338_v49 }
  0x8f   : > { %v323_v63 = vpop.permute.xlu2 %322 }
  0x9f   : > { %v255_v15 = vpop.xlane.xlu0 %254 }
  0xa0   : > { %v261_v16 = vpop.xlane.xlu1 %260  ;;  %v265_v17 = vmul.f32 0.00390625, %v255_v15 }
  0xa1   : > { %v267_v19 = vmul.f32 0.00390625, %v261_v16 }
  0xa2   : > { %v273_v23 = vmul.f32 %v269_v18, %v265_v17 }
  0xa3   : > { %v275_v28 = vmul.f32 %v271_v20, %v267_v19 }
  0xa4   : > { %v278_v31 = vsel %vm277_vm0, %v273_v23, 0.0 }
  0xa5   : > { %v281_v34 = vsel %vm277_vm0, %v275_v28, 0.0 }
  0xa7   : > { %v258_v22 = vpop.xlane.xlu0 %257 }
  0xa8   : > { %v266_v24 = vmul.f32 0.00390625, %v258_v22  ;;  %v264_v26 = vpop.xlane.xlu1 %263 }
  0xa9   : > { %v268_v27 = vmul.f32 0.00390625, %v264_v26 }
  0xaa   : > { %v274_v29 = vmul.f32 %v270_v21, %v266_v24 }
  0xab   : > { %v276_v30 = vmul.f32 %v272_v25, %v268_v27 }
  0xac   : > { %v279_v32 = vsel %vm277_vm0, %v274_v29, 0.0 }
  0xad   : > { %v280_v33 = vadd.f32 %v279_v32, %v278_v31  ;;  %v283_v35 = vsel %vm277_vm0, %v276_v30, 0.0 }
  0xaf   : > { %v282_v36 = vadd.f32 %v281_v34, %v280_v33 }
  0xb1   : > { %v284_v37 = vadd.f32 %v283_v35, %v282_v36 }
  0xb3   : > { %v285_v40 = vrot.slane %v284_v37, 4 }
  0xb5   : > { %v286_v41 = vadd.f32 %v285_v40, %v284_v37 }
  0xb7   : > { %v287_v42 = vrot.slane %v286_v41, 2 }
  0xb9   : > { %v288_v43 = vadd.f32 %v287_v42, %v286_v41 }
  0xbb   : > { %v289_v44 = vrot.slane %v288_v43, 1 }
  0xbd   : > { %v290_v46 = vadd.f32 %v289_v44, %v288_v43 }
  0xbf   : > { %v292_v47 = vadd.f32 %v291_v45, %v290_v46 }
  0xc1   : > { %v293_v48 = vmax.f32 %v292_v47, 0.0 }
  0xc3   : > { %v298_v53 = vperm.slane %v293_v48, 0 }
  0xc5   : > { %v302_v54 = vmul.f32 %v298_v53, %v297_v50  ;;  %v301_v55 = vmul.f32 %v298_v53, %v296_v51  ;;  %v299_v56 = vmul.f32 %v298_v53, %v294_v52  ;;  %v300_v61 = vmul.f32 %v298_v53, %v295_v60 }
  0xc7   : > { %v312_v57 = vsel %vm277_vm0, %v302_v54, 0.0  ;;  %v309_v58 = vsel %vm277_vm0, %v301_v55, 0.0  ;;  %v303_v59 = vsel %vm277_vm0, %v299_v56, 0.0  ;;  %v306_v62 = vsel %vm277_vm0, %v300_v61, 0.0 }
  0xc8   : > { %313 = vadd.xlane.f32.xlu1 %v312_v57  ;;  %310 = vadd.xlane.f32.xlu0 %v309_v58 }
  0xc9   : > { %304 = vadd.xlane.f32.xlu2 %v303_v59 }
  0xd1   : > { %307 = vadd.xlane.f32.xlu2 %v306_v62 }
  0xdc   : > { %328 = vperm.xlu0 %623, %v890_v8  }
  0xe1   : > { %334 = vperm.xlu1 %624, %v890_v8  }
  0xe4   : > { %628 = vset.pattern.permute.xlu0 %v746_v0 }
  0xe9   : > { %340 = vperm.xlu2 %625, %v890_v8   ;;  %627 = vset.pattern.permute.xlu1 %v746_v0 }
  0xf1   : > { %626 = vset.pattern.permute.xlu2 %v746_v0 }
 0x13b   : > { %v311_v14 = vpop.xlane.xlu0 %310  ;;  %v314_v17 = vpop.xlane.xlu1 %313 }
 0x13c   : > { %v305_v1 = vpop.xlane.xlu2 %304 }
 0x13d   : > { %v346_v5 = vadd.f32 %v323_v63, %v305_v1 }
 0x13f   : > { %v560_v7 = vmul.f32 -1.442695, %v346_v5 }
 0x141   : > { %630 = vpow2.f32 %v560_v7 }
 0x144   : > { %v308_v13 = vpop.xlane.xlu2 %307 }
 0x147   : > { %v631_v15 = vpop.eup %630 }
 0x148   : > { %v362_v16 = vadd.f32 1.0, %v631_v15 }
 0x14a   : > { %632 = vrcp.f32 %v362_v16  ;;  %v377_v28 = vand.u32 2147483648, %v362_v16  ;;  %v375_v30 = vand.u32 2147483647, %v362_v16  ;;  %vm371_vm2 = vweird.f32 %v362_v16 }
 0x14c   : > { %v341_v18 = vpop.permute.xlu2 %340  ;;  %v378_v35 = vor.u32 1.1754944e-38, %v377_v28  ;;  %vm376_vm4 = vcmp.eq.f32.partialorder %v375_v30, 8.507059e+37 }
 0x14d   : > { %v349_v19 = vadd.f32 %v341_v18, %v314_v17 }
 0x14e   : > { %v329_v20 = vpop.permute.xlu0 %328 }
 0x14f   : > { %v563_v21 = vmul.f32 -1.442695, %v349_v19  ;;  %v347_v8 = vadd.f32 %v329_v20, %v308_v13 }
 0x150   : > { %v633_v22 = vpop.eup %632 }
 0x151   : > { %634 = vpow2.f32 %v563_v21  ;;  %v561_v23 = vmul.f32 -1.442695, %v347_v8  ;;  %v367_v24 = vmul.f32 %v633_v22, %v362_v16  ;;  %vm372_vm1 = vweird.f32 %v633_v22 }
 0x152   : > { %vm373_vm3 = vmor %vm371_vm2, %vm372_vm1 }
 0x153   : > { %636 = vpow2.f32 %v561_v23  ;;  %v335_v25 = vpop.permute.xlu1 %334  ;;  %v368_v26 = vsub.f32 1.0, %v367_v24 }
 0x154   : > { %v348_v27 = vadd.f32 %v335_v25, %v311_v14 }
 0x155   : > { %v369_v29 = vmul.f32 %v633_v22, %v368_v26 }
 0x156   : > { %v562_v31 = vmul.f32 -1.442695, %v348_v27 }
 0x157   : > { %v635_v32 = vpop.eup %634  ;;  %v370_v33 = vadd.f32 %v633_v22, %v369_v29 }
 0x158   : > { %v365_v34 = vadd.f32 1.0, %v635_v32  ;;  %638 = vpow2.f32 %v562_v31 }
 0x159   : > { %v637_v36 = vpop.eup %636  ;;  %v374_v37 = vsel %vm373_vm3, %v633_v22, %v370_v33 }
 0x15a   : > { %640 = vrcp.f32 %v365_v34  ;;  %v363_v38 = vadd.f32 1.0, %v637_v36  ;;  %v379_v39 = vsel %vm376_vm4, %v378_v35, %v374_v37  ;;  %v422_v0 = vand.u32 2147483648, %v365_v34 }
 0x15b   : > { %428 = vperm.xlu2 %626, %v379_v39   ;;  %vm416_vm13 = vweird.f32 %v365_v34  ;;  %v420_v5 = vand.u32 2147483647, %v365_v34 }
 0x15c   : > { %642 = vrcp.f32 %v363_v38  ;;  %v392_v48 = vand.u32 2147483648, %v363_v38  ;;  %v390_v51 = vand.u32 2147483647, %v363_v38  ;;  %vm386_vm6 = vweird.f32 %v363_v38 }
 0x15d   : > { %v423_v15 = vor.u32 1.1754944e-38, %v422_v0  ;;  %vm421_vm0 = vcmp.eq.f32.partialorder %v420_v5, 8.507059e+37 }
 0x15e   : > { %v639_v40 = vpop.eup %638  ;;  %v393_v55 = vor.u32 1.1754944e-38, %v392_v48  ;;  %vm391_vm8 = vcmp.eq.f32.partialorder %v390_v51, 8.507059e+37 }
 0x15f   : > { %v364_v41 = vadd.f32 1.0, %v639_v40 }
 0x160   : > { %v641_v42 = vpop.eup %640 }
 0x161   : > { %644 = vrcp.f32 %v364_v41  ;;  %v412_v44 = vmul.f32 %v641_v42, %v365_v34  ;;  %v407_v58 = vand.u32 2147483648, %v364_v41  ;;  %v405_v61 = vand.u32 2147483647, %v364_v41 }
 0x162   : > { %v643_v43 = vpop.eup %642  ;;  %vm417_vm10 = vweird.f32 %v641_v42  ;;  %vm401_vm11 = vweird.f32 %v364_v41 }
 0x163   : > { %v382_v45 = vmul.f32 %v643_v43, %v363_v38  ;;  %v413_v47 = vsub.f32 1.0, %v412_v44  ;;  %vm387_vm5 = vweird.f32 %v643_v43  ;;  %v408_v1 = vor.u32 1.1754944e-38, %v407_v58  ;;  %vm418_vm15 = vmor %vm416_vm13, %vm417_vm10 }
 0x164   : > { %vm388_vm7 = vmor %vm386_vm6, %vm387_vm5  ;;  %vm406_vm14 = vcmp.eq.f32.partialorder %v405_v61, 8.507059e+37 }
 0x165   : > { %v383_v46 = vsub.f32 1.0, %v382_v45  ;;  %v414_v54 = vmul.f32 %v641_v42, %v413_v47 }
 0x167   : > { %v645_v49 = vpop.eup %644  ;;  %v384_v50 = vmul.f32 %v643_v43, %v383_v46  ;;  %v415_v62 = vadd.f32 %v641_v42, %v414_v54 }
 0x168   : > { %v397_v52 = vmul.f32 %v645_v49, %v364_v41  ;;  %vm402_vm9 = vweird.f32 %v645_v49 }
 0x169   : > { %v385_v53 = vadd.f32 %v643_v43, %v384_v50  ;;  %vm403_vm12 = vmor %vm401_vm11, %vm402_vm9  ;;  %v419_v14 = vsel %vm418_vm15, %v641_v42, %v415_v62 }
 0x16a   : > { %v398_v56 = vsub.f32 1.0, %v397_v52  ;;  %v424_v16 = vsel %vm421_vm0, %v423_v15, %v419_v14 }
 0x16b   : > { %v389_v57 = vsel %vm388_vm7, %v643_v43, %v385_v53 }
 0x16c   : > { %v394_v59 = vsel %vm391_vm8, %v393_v55, %v389_v57  ;;  %v399_v60 = vmul.f32 %v645_v49, %v398_v56 }
 0x16d   : > { %433 = vperm.xlu1 %627, %v394_v59  }
 0x16e   : > { %v400_v63 = vadd.f32 %v645_v49, %v399_v60 }
 0x170   : > { %v404_v7 = vsel %vm403_vm12, %v645_v49, %v400_v63 }
 0x171   : > { %v409_v13 = vsel %vm406_vm14, %v408_v1, %v404_v7 }
 0x172   : > { %438 = vperm.xlu2 %626, %v409_v13  }
 0x175   : > { %443 = vperm.xlu1 %627, %v424_v16  }
 0x1b5   : > { %v429_v17 = vpop.permute.xlu2 %428 }
 0x1b6   : > { %v446_v18 = vmul.f32 %v429_v17, %v875_v2  ;;  %v447_v19 = vmul.f32 %v429_v17, %v877_v3 }
 0x1b8   : > { %454 = vst [vmem:[%s244_s8] sm:$0xff] %v446_v18 }
 0x1b9   : > { %455 = vst [vmem:[%s244_s8 + $0x8] sm:$0xff] %v447_v19 }
 0x1cc   : > { %v439_v20 = vpop.permute.xlu2 %438 }
 0x1cd   : > { %v450_v21 = vmul.f32 %v439_v20, %v879_v4  ;;  %v451_v8 = vmul.f32 %v439_v20, %v883_v6 }
 0x1cf   : > { %458 = vst [vmem:[%s244_s8 + $0x20] sm:$0xff] %v450_v21 }
 0x1d0   : > { %459 = vst [vmem:[%s244_s8 + $0x28] sm:$0xff] %v451_v8 }
 0x1df   : > { %v434_v22 = vpop.permute.xlu1 %433 }
 0x1e0   : > { %v448_v23 = vmul.f32 %v434_v22, %v892_v9  ;;  %v449_v2 = vmul.f32 %v434_v22, %v894_v10 }
 0x1e2   : > { %456 = vst [vmem:[%s244_s8 + $0x10] sm:$0xff] %v448_v23 }
 0x1e3   : > { %457 = vst [vmem:[%s244_s8 + $0x18] sm:$0xff] %v449_v2 }
 0x1e7   : > { %v444_v3 = vpop.permute.xlu1 %443 }
 0x1e8   : > { %v452_v4 = vmul.f32 %v444_v3, %v896_v11  ;;  %v453_v6 = vmul.f32 %v444_v3, %v898_v12 }
 0x1ea   : > { %460 = vst [vmem:[%s244_s8 + $0x30] sm:$0xff] %v452_v4 }
 0x1eb   : > { %461 = vst [vmem:[%s244_s8 + $0x38] sm:$0xff] %v453_v6 }
 0x1ec   : > { %703 = shalt.err (!%p700_p4)
}
 0x1ed   : > { %s747_s12 = smov 256   ;;  %s748_s26 = smov 16  }
 0x1ee   : > { %573 = dma.vmem_to_hbm [thread:$0]  (%p829_p11), %s476_s7, 1024, %s478_s11, %s463_s22, %s747_s12, %s747_s12, %s748_s26  }
 0x1ef PF: > { %s492_s8 = sand.u32 1, %s730_s18   ;;  %p997_p7 = scmp.ge.s32.totalorder %s742_s21, 2 }
 0x1f0   : > { %s493_s28 = scalar_lea.sflag [#allocation4], %s492_s8 }
 0x1f1   : > { %p580_p5 = pnand %p997_p7, %p833_p12 }
 0x1f3   : > { %p581_p8 = pneg %p580_p5 }
 0x1f5   : > { %725 = dma.done.wait (%p581_p8), %s493_s28, 1024  }
 0x1f6   : > { %727 = vsyncadd (%p581_p8), %s493_s28, 4294966272  ;;  %p18_p10 = scmp.ge.s32.totalorder %s804_s24, 4   ;;  %s998_s18 = smov %s734_s19 }
 0x1f7   : > { %s999_s19 = smov %s738_s20  ;;  %s1000_s20 = smov %s816_s27 }
 0x1f8   : > { %s1001_s21 = smov %s804_s24  ;;  %20 = sbr.rel (!%p18_p10) target bundleno = 5 (0x5), region = 85 }
 0x1fd   :  { %499 = vsyncpa [#allocation3], 1 }
 0x1fe   :  { %501 = vsyncpa [#allocation3 + $0x1], 1 }
 0x1ff   :  { %502 = vsyncpa [#allocation4], 1 }
 0x200   :  { %504 = vsyncpa [#allocation4 + $0x1], 1 }

</bundles_post_ra>
